<compile_context>
chip_gen: v5e
topology: v5e:2x2
jax: 0.10.0
libtpu: 0.0.40
codegen_flags: <defaults>
</compile_context>

<pallas_src>
import functools

import jax
import jax.numpy as jnp
from jax import lax
from jax.experimental import pallas as pl
from jax.experimental.pallas import tpu as pltpu


# -----------------------------------------------------------------------------
# Kernel
# -----------------------------------------------------------------------------
def _bottleneck_csp_kernel(
    x_ref,                     # (C1, Lb)  f32   chunk of bt images on the lane axis
    mask_ref,                  # (9, Lb)   f32   zero-padding masks for the 3x3 taps
    w12_ref, b1_ref, b2_ref,   # cv1+cv2 fused: (2c_, C1) bf16, (c_,1) f32, (c_,1) f32
    wm1_ref, bm1_ref,          # bottleneck cv1 (+BN):     (n, c_, c_) bf16, (n, c_, 1) f32
    wm2_ref, bm2_ref,          # bottleneck cv2 3x3 (+BN): (n, c_, 9c_) bf16, (n, c_, 1) f32
    w3_ref, b3_ref,            # cv3 (+post-cat BN slice): (c_, c_) bf16, (c_, 1) f32
    w4_ref, b4_ref,            # cv4 (+BN):                (C2, 2c_) bf16, (C2, 1) f32
    o_ref,                     # (C2, Lb) f32
    *, n, shortcut, W, c_, slope,
):
    f32 = jnp.float32
    bf16 = jnp.bfloat16
    lb = x_ref.shape[-1]

    def mm(w, v):              # bf16 x bf16 MXU GEMM, f32 accumulate
        return jnp.dot(w, v.astype(bf16), preferred_element_type=f32)

    def silu(v):               # x * sigmoid(x); divide goes to the EUP slot
        return v * pl.reciprocal(1.0 + jnp.exp(-v), approx=True)

    def leaky(v):
        return jnp.where(v >= 0, v, slope * v)

    x = x_ref[...]
    masks = mask_ref[...]                                   # (9, Lb)

    # cv1 and cv2 fused over x: one (2c_, C1) GEMM.
    y12 = mm(w12_ref[...], x)                               # (2c_, Lb) f32
    a = silu(y12[:c_] + b1_ref[...])                        # cv1 branch (conv+BN+SiLU)
    z2 = leaky(y12[c_:] + b2_ref[...])                      # cv2 branch (+post-cat BN, LeakyReLU)

    # m: n x Bottleneck(c_, c_, e=1.0)
    h = a
    for l in range(n):
        t = silu(mm(wm1_ref[l], h) + bm1_ref[l])            # 1x1 conv + BN + SiLU
        # 3x3 conv (pad=1): 9 shifted taps stacked along K -> one GEMM.
        taps = []
        k = 0
        for dy in (-1, 0, 1):
            for dx in (-1, 0, 1):
                s = dy * W + dx
                src = t if s == 0 else pltpu.roll(t, shift=(-s) % lb, axis=1)
                if s != 0:
                    src = src * masks[k]                    # zero out-of-image taps
                taps.append(src)
                k += 1
        stacked = jnp.concatenate(taps, axis=0).astype(bf16)        # (9c_, Lb)
        c = silu(jnp.dot(wm2_ref[l], stacked, preferred_element_type=f32) + bm2_ref[l])
        h = (h + c) if shortcut else c

    # cv3 branch (+post-cat BN slice, LeakyReLU), then cv4 over the virtual concat.
    z1 = leaky(mm(w3_ref[...], h) + b3_ref[...])
    z = jnp.concatenate([z1, z2], axis=0).astype(bf16)               # (2c_, Lb)
    o_ref[...] = silu(jnp.dot(w4_ref[...], z, preferred_element_type=f32)
                      + b4_ref[...]).astype(o_ref.dtype)


# -----------------------------------------------------------------------------
# Wrapper: BN folding, layout, tiling, pallas_call
# -----------------------------------------------------------------------------
def _fold_bn(w, gamma, beta, mean, var, eps=1e-5):
    scale = gamma / jnp.sqrt(var + eps)
    wf = w * scale.reshape((-1,) + (1,) * (w.ndim - 1))
    bf = beta - scale * mean
    return wf, bf


def bottleneck_csp(x, params, *, n=1, shortcut=True):
    """Eval-mode BottleneckCSP forward. x: (B, C1, H, W) NCHW float32."""
    assert n >= 1
    B, C1, H, W = x.shape
    C2 = params["cv4_w"].shape[0]
    c_ = params["cv1_w"].shape[0]
    HW = H * W
    HWp = ((HW + 127) // 128) * 128            # lane-dense (multiple of 128) pixel axis
    bf16 = jnp.bfloat16

    # ---- fold every BatchNorm into the adjacent conv; GEMM weights -> bf16 ---
    w1, b1 = _fold_bn(params["cv1_w"][:, :, 0, 0], *params["cv1_bn"])
    wm1_l, bm1_l, wm2_l, bm2_l = [], [], [], []
    for l in range(n):
        wa, ba = _fold_bn(params[f"m{l}_cv1_w"][:, :, 0, 0], *params[f"m{l}_cv1_bn"])
        wb, bb = _fold_bn(params[f"m{l}_cv2_w"], *params[f"m{l}_cv2_bn"])  # (c_, c_, 3, 3)
        wm1_l.append(wa)
        bm1_l.append(ba)
        # K-stacked 3x3 weight: column index = tap*c_ + cin, tap = (dy+1)*3 + (dx+1)
        wm2_l.append(jnp.transpose(wb, (0, 2, 3, 1)).reshape(c_, 9 * c_))
        bm2_l.append(bb)
    wm1 = jnp.stack(wm1_l).astype(bf16)                  # (n, c_, c_)
    bm1 = jnp.stack(bm1_l)[..., None]                    # (n, c_, 1) f32
    wm2 = jnp.stack(wm2_l).astype(bf16)                  # (n, c_, 9c_)
    bm2 = jnp.stack(bm2_l)[..., None]                    # (n, c_, 1) f32

    # post-concat BN, split across the two branches and folded into cv3 / cv2
    g, bshift, mu, var = params["bn"]
    sc = g / jnp.sqrt(var + 1e-5)
    sh = bshift - sc * mu
    w3 = (params["cv3_w"][:, :, 0, 0] * sc[:c_, None]).astype(bf16)
    b3 = sh[:c_]
    w2 = params["cv2_w"][:, :, 0, 0] * sc[c_:, None]
    b2 = sh[c_:]

    w12 = jnp.concatenate([w1, w2], axis=0).astype(bf16)   # cv1+cv2 fused: (2c_, C1)

    w4, b4 = _fold_bn(params["cv4_w"][:, :, 0, 0], *params["cv4_bn"])
    w4 = w4.astype(bf16)                                    # (C2, 2c_)

    # ---- VMEM budgeting + batch chunking (batch folded into the lane axis) ---
    try:
        phys_vmem = int(pltpu.get_tpu_info().vmem_capacity_bytes)
    except Exception:
        phys_vmem = 64 * 2**20                 # be conservative: v7x per-TensorCore VMEM
    weight_bytes = sum(int(a.size) * a.dtype.itemsize
                       for a in (w12, wm1, wm2, w3, w4, b1, b2, bm1, bm2, b3, b4))
    # per-image working set: dbl-buffered in/out blocks + masks + f32/bf16 temporaries
    per_img = HWp * (4 * 2 * (C1 + C2) + 4 * 9 + 4 * 20 * c_ + 2 * 9 * c_)
    budget = int(0.35 * phys_vmem)
    bt = max(1, min(B, budget // max(per_img, 1)))
    if B >= 2:
        bt = min(bt, B // 2)                   # >= 2 parallel grid steps (v7x: 2 TCs)
    bt = max(bt, 1)
    while B % bt:
        bt -= 1
    Lb = bt * HWp
    grid = (B // bt,)
    vmem_limit = int(min(int(0.85 * phys_vmem),
                         max(32 * 2**20, bt * per_img + weight_bytes + (8 << 20))))

    # ---- layout: (C1, B*HWp) channels-major, batch folded into lanes ----------
    x_flat = x.reshape(B, C1, HW)
    if HWp != HW:
        x_flat = jnp.pad(x_flat, ((0, 0), (0, 0), (0, HWp - HW)))
    x_lane = jnp.transpose(x_flat, (1, 0, 2)).reshape(C1, B * HWp)

    # zero-padding validity masks for the 9 taps of the 3x3 conv (tiled over the chunk)
    q = jnp.arange(HWp)
    rows, cols = q // W, q % W
    mlist = []
    for dy in (-1, 0, 1):
        for dx in (-1, 0, 1):
            ok = (rows + dy >= 0) & (rows + dy < H) & (cols + dx >= 0) & (cols + dx < W)
            mlist.append(ok)
    mask = jnp.tile(jnp.stack(mlist).astype(jnp.float32), (1, bt))    # (9, Lb)

    flops_per_px = 4 * c_ * C1 + n * 20 * c_ * c_ + 2 * c_ * c_ + 4 * C2 * c_
    cost = pl.CostEstimate(
        flops=int(B * HW * flops_per_px),
        transcendentals=int(2 * B * HW * (c_ * (1 + 2 * n) + C2)),
        bytes_accessed=int(4 * (x_lane.size + B * C2 * HWp) + weight_bytes),
    )

    def resident(arr):
        r = arr.ndim
        return pl.BlockSpec(arr.shape, lambda b: (0,) * r)

    col = lambda v: v.reshape(-1, 1)
    args = (x_lane, mask,
            w12, col(b1), col(b2),
            wm1, bm1,
            wm2, bm2,
            w3, col(b3),
            w4, col(b4))
    in_specs = [pl.BlockSpec((C1, Lb), lambda b: (0, b)),
                resident(mask)] + [resident(a) for a in args[2:]]

    kern = functools.partial(_bottleneck_csp_kernel,
                             n=n, shortcut=shortcut, W=W, c_=c_, slope=0.1)

    out_lane = pl.pallas_call(
        kern,
        out_shape=jax.ShapeDtypeStruct((C2, B * HWp), x.dtype),
        grid_spec=pltpu.PrefetchScalarGridSpec(
            num_scalar_prefetch=0,
            grid=grid,
            in_specs=in_specs,
            out_specs=pl.BlockSpec((C2, Lb), lambda b: (0, b)),
        ),
        compiler_params=pltpu.CompilerParams(
            dimension_semantics=("parallel",),
            vmem_limit_bytes=vmem_limit,
        ),
        cost_estimate=cost,
    )(*args)

    out = out_lane.reshape(C2, B, HWp).transpose(1, 0, 2)[:, :, :HW]
    return out.reshape(B, C2, H, W)


# -----------------------------------------------------------------------------
# Pure-JAX reference (mirrors the PyTorch module in eval mode) + params
# -----------------------------------------------------------------------------
def _reference(x, params, *, n=1, shortcut=True):
    eps = 1e-5

    def conv(v, w, pad):
        return lax.conv_general_dilated(
            v, w, window_strides=(1, 1), padding=[(pad, pad), (pad, pad)],
            dimension_numbers=("NCHW", "OIHW", "NCHW"),
            precision=lax.Precision.HIGHEST)

    def bn(v, p):
        g, b, m, var = p
        s = g / jnp.sqrt(var + eps)
        return v * s[None, :, None, None] + (b - s * m)[None, :, None, None]

    def conv_block(v, w, bnp, pad):          # Conv = conv + BN + SiLU
        return jax.nn.silu(bn(conv(v, w, pad), bnp))

    y = conv_block(x, params["cv1_w"], params["cv1_bn"], 0)
    for l in range(n):
        t = conv_block(y, params[f"m{l}_cv1_w"], params[f"m{l}_cv1_bn"], 0)
        t = conv_block(t, params[f"m{l}_cv2_w"], params[f"m{l}_cv2_bn"], 1)
        y = y + t if shortcut else t
    y1 = conv(y, params["cv3_w"], 0)
    y2 = conv(x, params["cv2_w"], 0)
    z = bn(jnp.concatenate([y1, y2], axis=1), params["bn"])
    z = jnp.where(z >= 0, z, 0.1 * z)        # LeakyReLU(0.1)
    return conv_block(z, params["cv4_w"], params["cv4_bn"], 0)


def _init_params(key, c1, c2, n=1, e=0.5):
    c_ = int(c2 * e)
    keys = iter(jax.random.split(key, 64))

    def conv_w(co, ci, k):
        return 0.1 * jax.random.normal(next(keys), (co, ci, k, k), jnp.float32)

    def bn_p(c):
        return (1.0 + 0.1 * jax.random.normal(next(keys), (c,), jnp.float32),  # gamma
                0.1 * jax.random.normal(next(keys), (c,), jnp.float32),        # beta
                0.1 * jax.random.normal(next(keys), (c,), jnp.float32),        # running mean
                0.5 + jax.random.uniform(next(keys), (c,), jnp.float32))       # running var

    p = {
        "cv1_w": conv_w(c_, c1, 1), "cv1_bn": bn_p(c_),
        "cv2_w": conv_w(c_, c1, 1),
        "cv3_w": conv_w(c_, c_, 1),
        "cv4_w": conv_w(c2, 2 * c_, 1), "cv4_bn": bn_p(c2),
        "bn": bn_p(2 * c_),
    }
    for l in range(n):
        p[f"m{l}_cv1_w"] = conv_w(c_, c_, 1)
        p[f"m{l}_cv1_bn"] = bn_p(c_)
        p[f"m{l}_cv2_w"] = conv_w(c_, c_, 3)
        p[f"m{l}_cv2_bn"] = bn_p(c_)
    return p


if __name__ == "__main__":
    def _run_case(key, B, C1, C2, H, W, n, shortcut):
        kx, kp = jax.random.split(key)
        x = jax.random.normal(kx, (B, C1, H, W), dtype=jnp.float32)
        params = _init_params(kp, C1, C2, n=n)
        out = jax.block_until_ready(bottleneck_csp(x, params, n=n, shortcut=shortcut))
        ref = _reference(x, params, n=n, shortcut=shortcut)
        assert out.shape == ref.shape
        max_err = float(jnp.max(jnp.abs(out - ref)))
        # bf16 MXU operands + approx reciprocal -> looser tolerance than pure f32
        assert jnp.allclose(out, ref, atol=2e-2, rtol=2e-2), f"max abs err {max_err}"

    key = jax.random.PRNGKey(0)
    k1, k2 = jax.random.split(key)
    _run_case(k1, B=2, C1=16, C2=16, H=16, W=16, n=1, shortcut=True)
    # HW not a multiple of 128, multiple bottlenecks, no shortcut: locks in the
    # padded-lane-tail / tap-mask invariant flagged in the review.
    _run_case(k2, B=3, C1=16, C2=16, H=10, W=10, n=2, shortcut=False)
    print("KERNEL_OK")
</pallas_src>

<mosaic_0001>
module attributes {stable_mosaic.version = 11 : i64} {
  func.func @_bottleneck_csp_kernel(%arg0: i32, %arg1: memref<16x256xf32, #tpu.memory_space<vmem>>, %arg2: memref<9x256xf32, #tpu.memory_space<vmem>>, %arg3: memref<16x16xbf16, #tpu.memory_space<vmem>>, %arg4: memref<8x1xf32, #tpu.memory_space<vmem>>, %arg5: memref<8x1xf32, #tpu.memory_space<vmem>>, %arg6: memref<1x8x8xbf16, #tpu.memory_space<vmem>>, %arg7: memref<1x8x1xf32, #tpu.memory_space<vmem>>, %arg8: memref<1x8x72xbf16, #tpu.memory_space<vmem>>, %arg9: memref<1x8x1xf32, #tpu.memory_space<vmem>>, %arg10: memref<8x8xbf16, #tpu.memory_space<vmem>>, %arg11: memref<8x1xf32, #tpu.memory_space<vmem>>, %arg12: memref<16x16xbf16, #tpu.memory_space<vmem>>, %arg13: memref<16x1xf32, #tpu.memory_space<vmem>>, %arg14: memref<16x256xf32, #tpu.memory_space<vmem>>) attributes {dimension_semantics = [#tpu.dimension_semantics<parallel>], iteration_bounds = array<i64: 2>, scalar_prefetch = 0 : i64, scratch_operands = 0 : i64, tpu.core_type = #tpu.core_type<tc>, window_params = [{transform_indices = @transform_0, window_bounds = array<i64: 16, 256>}, {pipeline_mode = #tpu.pipeline_mode<synchronous>, transform_indices = @transform_1, window_bounds = array<i64: 9, 256>}, {pipeline_mode = #tpu.pipeline_mode<synchronous>, transform_indices = @transform_2, window_bounds = array<i64: 16, 16>}, {pipeline_mode = #tpu.pipeline_mode<synchronous>, transform_indices = @transform_3, window_bounds = array<i64: 8, 1>}, {pipeline_mode = #tpu.pipeline_mode<synchronous>, transform_indices = @transform_4, window_bounds = array<i64: 8, 1>}, {pipeline_mode = #tpu.pipeline_mode<synchronous>, transform_indices = @transform_5, window_bounds = array<i64: 1, 8, 8>}, {pipeline_mode = #tpu.pipeline_mode<synchronous>, transform_indices = @transform_6, window_bounds = array<i64: 1, 8, 1>}, {pipeline_mode = #tpu.pipeline_mode<synchronous>, transform_indices = @transform_7, window_bounds = array<i64: 1, 8, 72>}, {pipeline_mode = #tpu.pipeline_mode<synchronous>, transform_indices = @transform_8, window_bounds = array<i64: 1, 8, 1>}, {pipeline_mode = #tpu.pipeline_mode<synchronous>, transform_indices = @transform_9, window_bounds = array<i64: 8, 8>}, {pipeline_mode = #tpu.pipeline_mode<synchronous>, transform_indices = @transform_10, window_bounds = array<i64: 8, 1>}, {pipeline_mode = #tpu.pipeline_mode<synchronous>, transform_indices = @transform_11, window_bounds = array<i64: 16, 16>}, {pipeline_mode = #tpu.pipeline_mode<synchronous>, transform_indices = @transform_12, window_bounds = array<i64: 16, 1>}, {transform_indices = @transform_13, window_bounds = array<i64: 16, 256>}]} {
    %c0 = arith.constant 0 : index
    %c0_0 = arith.constant 0 : index
    %0 = vector.load %arg1[%c0, %c0_0] : memref<16x256xf32, #tpu.memory_space<vmem>>, vector<16x256xf32>
    %c0_1 = arith.constant 0 : index
    %c0_2 = arith.constant 0 : index
    %1 = vector.load %arg2[%c0_1, %c0_2] : memref<9x256xf32, #tpu.memory_space<vmem>>, vector<9x256xf32>
    %c0_3 = arith.constant 0 : index
    %c0_4 = arith.constant 0 : index
    %2 = vector.load %arg3[%c0_3, %c0_4] : memref<16x16xbf16, #tpu.memory_space<vmem>>, vector<16x16xbf16>
    %3 = arith.truncf %0 : vector<16x256xf32> to vector<16x256xbf16>
    %cst = arith.constant dense<0.000000e+00> : vector<16x256xf32>
    %4 = tpu.matmul %2, %3, %cst {dimension_numbers = #tpu.dot_dimension_numbers<[1], [0], [0], [1], [0, 0, 1, 1], [], []>} : vector<16x16xbf16>, vector<16x256xbf16>, vector<16x256xf32> -> vector<16x256xf32>
    %5 = vector.extract_strided_slice %4 {offsets = [0, 0], sizes = [8, 256], strides = [1, 1]} : vector<16x256xf32> to vector<8x256xf32>
    %c0_5 = arith.constant 0 : index
    %c0_6 = arith.constant 0 : index
    %6 = vector.load %arg4[%c0_5, %c0_6] : memref<8x1xf32, #tpu.memory_space<vmem>>, vector<8x1xf32>
    %7 = vector.broadcast %6 : vector<8x1xf32> to vector<8x256xf32>
    %8 = arith.addf %5, %7 : vector<8x256xf32>
    %cst_7 = arith.constant 0.000000e+00 : f32
    %9 = vector.broadcast %cst_7 : f32 to vector<8x256xf32>
    %10 = arith.subf %9, %8 : vector<8x256xf32>
    %11 = math.exp %10 : vector<8x256xf32>
    %cst_8 = arith.constant 1.000000e+00 : f32
    %12 = vector.broadcast %cst_8 : f32 to vector<8x256xf32>
    %13 = arith.addf %12, %11 : vector<8x256xf32>
    %14 = tpu.reciprocal %13 {approx = true} : vector<8x256xf32> -> vector<8x256xf32>
    %15 = arith.mulf %8, %14 : vector<8x256xf32>
    %16 = vector.extract_strided_slice %4 {offsets = [8, 0], sizes = [8, 256], strides = [1, 1]} : vector<16x256xf32> to vector<8x256xf32>
    %c0_9 = arith.constant 0 : index
    %c0_10 = arith.constant 0 : index
    %17 = vector.load %arg5[%c0_9, %c0_10] : memref<8x1xf32, #tpu.memory_space<vmem>>, vector<8x1xf32>
    %18 = vector.broadcast %17 : vector<8x1xf32> to vector<8x256xf32>
    %19 = arith.addf %16, %18 : vector<8x256xf32>
    %cst_11 = arith.constant 0.000000e+00 : f32
    %20 = vector.broadcast %cst_11 : f32 to vector<8x256xf32>
    %21 = arith.cmpf oge, %19, %20 : vector<8x256xf32>
    %cst_12 = arith.constant 1.000000e-01 : f32
    %22 = vector.broadcast %cst_12 : f32 to vector<8x256xf32>
    %23 = arith.mulf %22, %19 : vector<8x256xf32>
    %24 = arith.select %21, %19, %23 : vector<8x256xi1>, vector<8x256xf32>
    %c0_13 = arith.constant 0 : index
    %c0_14 = arith.constant 0 : index
    %c0_15 = arith.constant 0 : index
    %25 = vector.load %arg6[%c0_13, %c0_14, %c0_15] : memref<1x8x8xbf16, #tpu.memory_space<vmem>>, vector<1x8x8xbf16>
    %26 = vector.shape_cast %25 : vector<1x8x8xbf16> to vector<8x8xbf16>
    %27 = arith.truncf %15 : vector<8x256xf32> to vector<8x256xbf16>
    %cst_16 = arith.constant dense<0.000000e+00> : vector<8x256xf32>
    %28 = tpu.matmul %26, %27, %cst_16 {dimension_numbers = #tpu.dot_dimension_numbers<[1], [0], [0], [1], [0, 0, 1, 1], [], []>} : vector<8x8xbf16>, vector<8x256xbf16>, vector<8x256xf32> -> vector<8x256xf32>
    %c0_17 = arith.constant 0 : index
    %c0_18 = arith.constant 0 : index
    %c0_19 = arith.constant 0 : index
    %29 = vector.load %arg7[%c0_17, %c0_18, %c0_19] : memref<1x8x1xf32, #tpu.memory_space<vmem>>, vector<1x8x1xf32>
    %30 = vector.shape_cast %29 : vector<1x8x1xf32> to vector<8x1xf32>
    %31 = vector.broadcast %30 : vector<8x1xf32> to vector<8x256xf32>
    %32 = arith.addf %28, %31 : vector<8x256xf32>
    %cst_20 = arith.constant 0.000000e+00 : f32
    %33 = vector.broadcast %cst_20 : f32 to vector<8x256xf32>
    %34 = arith.subf %33, %32 : vector<8x256xf32>
    %35 = math.exp %34 : vector<8x256xf32>
    %cst_21 = arith.constant 1.000000e+00 : f32
    %36 = vector.broadcast %cst_21 : f32 to vector<8x256xf32>
    %37 = arith.addf %36, %35 : vector<8x256xf32>
    %38 = tpu.reciprocal %37 {approx = true} : vector<8x256xf32> -> vector<8x256xf32>
    %39 = arith.mulf %32, %38 : vector<8x256xf32>
    %c17_i32 = arith.constant 17 : i32
    %40 = tpu.dynamic_rotate %39 by %c17_i32 dim 1 : vector<8x256xf32>, i32 -> vector<8x256xf32>
    %41 = vector.extract_strided_slice %1 {offsets = [0, 0], sizes = [1, 256], strides = [1, 1]} : vector<9x256xf32> to vector<1x256xf32>
    %42 = vector.shape_cast %41 : vector<1x256xf32> to vector<256xf32>
    %43 = vector.shape_cast %42 : vector<256xf32> to vector<1x256xf32>
    %44 = vector.broadcast %43 : vector<1x256xf32> to vector<8x256xf32>
    %45 = arith.mulf %40, %44 : vector<8x256xf32>
    %c16_i32 = arith.constant 16 : i32
    %46 = tpu.dynamic_rotate %39 by %c16_i32 dim 1 : vector<8x256xf32>, i32 -> vector<8x256xf32>
    %47 = vector.extract_strided_slice %1 {offsets = [1, 0], sizes = [1, 256], strides = [1, 1]} : vector<9x256xf32> to vector<1x256xf32>
    %48 = vector.shape_cast %47 : vector<1x256xf32> to vector<256xf32>
    %49 = vector.shape_cast %48 : vector<256xf32> to vector<1x256xf32>
    %50 = vector.broadcast %49 : vector<1x256xf32> to vector<8x256xf32>
    %51 = arith.mulf %46, %50 : vector<8x256xf32>
    %c15_i32 = arith.constant 15 : i32
    %52 = tpu.dynamic_rotate %39 by %c15_i32 dim 1 : vector<8x256xf32>, i32 -> vector<8x256xf32>
    %53 = vector.extract_strided_slice %1 {offsets = [2, 0], sizes = [1, 256], strides = [1, 1]} : vector<9x256xf32> to vector<1x256xf32>
    %54 = vector.shape_cast %53 : vector<1x256xf32> to vector<256xf32>
    %55 = vector.shape_cast %54 : vector<256xf32> to vector<1x256xf32>
    %56 = vector.broadcast %55 : vector<1x256xf32> to vector<8x256xf32>
    %57 = arith.mulf %52, %56 : vector<8x256xf32>
    %c1_i32 = arith.constant 1 : i32
    %58 = tpu.dynamic_rotate %39 by %c1_i32 dim 1 : vector<8x256xf32>, i32 -> vector<8x256xf32>
    %59 = vector.extract_strided_slice %1 {offsets = [3, 0], sizes = [1, 256], strides = [1, 1]} : vector<9x256xf32> to vector<1x256xf32>
    %60 = vector.shape_cast %59 : vector<1x256xf32> to vector<256xf32>
    %61 = vector.shape_cast %60 : vector<256xf32> to vector<1x256xf32>
    %62 = vector.broadcast %61 : vector<1x256xf32> to vector<8x256xf32>
    %63 = arith.mulf %58, %62 : vector<8x256xf32>
    %c255_i32 = arith.constant 255 : i32
    %64 = tpu.dynamic_rotate %39 by %c255_i32 dim 1 : vector<8x256xf32>, i32 -> vector<8x256xf32>
    %65 = vector.extract_strided_slice %1 {offsets = [5, 0], sizes = [1, 256], strides = [1, 1]} : vector<9x256xf32> to vector<1x256xf32>
    %66 = vector.shape_cast %65 : vector<1x256xf32> to vector<256xf32>
    %67 = vector.shape_cast %66 : vector<256xf32> to vector<1x256xf32>
    %68 = vector.broadcast %67 : vector<1x256xf32> to vector<8x256xf32>
    %69 = arith.mulf %64, %68 : vector<8x256xf32>
    %c241_i32 = arith.constant 241 : i32
    %70 = tpu.dynamic_rotate %39 by %c241_i32 dim 1 : vector<8x256xf32>, i32 -> vector<8x256xf32>
    %71 = vector.extract_strided_slice %1 {offsets = [6, 0], sizes = [1, 256], strides = [1, 1]} : vector<9x256xf32> to vector<1x256xf32>
    %72 = vector.shape_cast %71 : vector<1x256xf32> to vector<256xf32>
    %73 = vector.shape_cast %72 : vector<256xf32> to vector<1x256xf32>
    %74 = vector.broadcast %73 : vector<1x256xf32> to vector<8x256xf32>
    %75 = arith.mulf %70, %74 : vector<8x256xf32>
    %c240_i32 = arith.constant 240 : i32
    %76 = tpu.dynamic_rotate %39 by %c240_i32 dim 1 : vector<8x256xf32>, i32 -> vector<8x256xf32>
    %77 = vector.extract_strided_slice %1 {offsets = [7, 0], sizes = [1, 256], strides = [1, 1]} : vector<9x256xf32> to vector<1x256xf32>
    %78 = vector.shape_cast %77 : vector<1x256xf32> to vector<256xf32>
    %79 = vector.shape_cast %78 : vector<256xf32> to vector<1x256xf32>
    %80 = vector.broadcast %79 : vector<1x256xf32> to vector<8x256xf32>
    %81 = arith.mulf %76, %80 : vector<8x256xf32>
    %c239_i32 = arith.constant 239 : i32
    %82 = tpu.dynamic_rotate %39 by %c239_i32 dim 1 : vector<8x256xf32>, i32 -> vector<8x256xf32>
    %83 = vector.extract_strided_slice %1 {offsets = [8, 0], sizes = [1, 256], strides = [1, 1]} : vector<9x256xf32> to vector<1x256xf32>
    %84 = vector.shape_cast %83 : vector<1x256xf32> to vector<256xf32>
    %85 = vector.shape_cast %84 : vector<256xf32> to vector<1x256xf32>
    %86 = vector.broadcast %85 : vector<1x256xf32> to vector<8x256xf32>
    %87 = arith.mulf %82, %86 : vector<8x256xf32>
    %88 = tpu.concatenate %45, %51, %57, %63, %39, %69, %75, %81, %87 in 0 : vector<8x256xf32>, vector<8x256xf32>, vector<8x256xf32>, vector<8x256xf32>, vector<8x256xf32>, vector<8x256xf32>, vector<8x256xf32>, vector<8x256xf32>, vector<8x256xf32> -> vector<72x256xf32>
    %89 = arith.truncf %88 : vector<72x256xf32> to vector<72x256xbf16>
    %c0_22 = arith.constant 0 : index
    %c0_23 = arith.constant 0 : index
    %c0_24 = arith.constant 0 : index
    %90 = vector.load %arg8[%c0_22, %c0_23, %c0_24] : memref<1x8x72xbf16, #tpu.memory_space<vmem>>, vector<1x8x72xbf16>
    %91 = vector.shape_cast %90 : vector<1x8x72xbf16> to vector<8x72xbf16>
    %cst_25 = arith.constant dense<0.000000e+00> : vector<8x256xf32>
    %92 = tpu.matmul %91, %89, %cst_25 {dimension_numbers = #tpu.dot_dimension_numbers<[1], [0], [0], [1], [0, 0, 1, 1], [], []>} : vector<8x72xbf16>, vector<72x256xbf16>, vector<8x256xf32> -> vector<8x256xf32>
    %c0_26 = arith.constant 0 : index
    %c0_27 = arith.constant 0 : index
    %c0_28 = arith.constant 0 : index
    %93 = vector.load %arg9[%c0_26, %c0_27, %c0_28] : memref<1x8x1xf32, #tpu.memory_space<vmem>>, vector<1x8x1xf32>
    %94 = vector.shape_cast %93 : vector<1x8x1xf32> to vector<8x1xf32>
    %95 = vector.broadcast %94 : vector<8x1xf32> to vector<8x256xf32>
    %96 = arith.addf %92, %95 : vector<8x256xf32>
    %cst_29 = arith.constant 0.000000e+00 : f32
    %97 = vector.broadcast %cst_29 : f32 to vector<8x256xf32>
    %98 = arith.subf %97, %96 : vector<8x256xf32>
    %99 = math.exp %98 : vector<8x256xf32>
    %cst_30 = arith.constant 1.000000e+00 : f32
    %100 = vector.broadcast %cst_30 : f32 to vector<8x256xf32>
    %101 = arith.addf %100, %99 : vector<8x256xf32>
    %102 = tpu.reciprocal %101 {approx = true} : vector<8x256xf32> -> vector<8x256xf32>
    %103 = arith.mulf %96, %102 : vector<8x256xf32>
    %104 = arith.addf %15, %103 : vector<8x256xf32>
    %c0_31 = arith.constant 0 : index
    %c0_32 = arith.constant 0 : index
    %105 = vector.load %arg10[%c0_31, %c0_32] : memref<8x8xbf16, #tpu.memory_space<vmem>>, vector<8x8xbf16>
    %106 = arith.truncf %104 : vector<8x256xf32> to vector<8x256xbf16>
    %cst_33 = arith.constant dense<0.000000e+00> : vector<8x256xf32>
    %107 = tpu.matmul %105, %106, %cst_33 {dimension_numbers = #tpu.dot_dimension_numbers<[1], [0], [0], [1], [0, 0, 1, 1], [], []>} : vector<8x8xbf16>, vector<8x256xbf16>, vector<8x256xf32> -> vector<8x256xf32>
    %c0_34 = arith.constant 0 : index
    %c0_35 = arith.constant 0 : index
    %108 = vector.load %arg11[%c0_34, %c0_35] : memref<8x1xf32, #tpu.memory_space<vmem>>, vector<8x1xf32>
    %109 = vector.broadcast %108 : vector<8x1xf32> to vector<8x256xf32>
    %110 = arith.addf %107, %109 : vector<8x256xf32>
    %cst_36 = arith.constant 0.000000e+00 : f32
    %111 = vector.broadcast %cst_36 : f32 to vector<8x256xf32>
    %112 = arith.cmpf oge, %110, %111 : vector<8x256xf32>
    %cst_37 = arith.constant 1.000000e-01 : f32
    %113 = vector.broadcast %cst_37 : f32 to vector<8x256xf32>
    %114 = arith.mulf %113, %110 : vector<8x256xf32>
    %115 = arith.select %112, %110, %114 : vector<8x256xi1>, vector<8x256xf32>
    %116 = tpu.concatenate %115, %24 in 0 : vector<8x256xf32>, vector<8x256xf32> -> vector<16x256xf32>
    %117 = arith.truncf %116 : vector<16x256xf32> to vector<16x256xbf16>
    %c0_38 = arith.constant 0 : index
    %c0_39 = arith.constant 0 : index
    %118 = vector.load %arg12[%c0_38, %c0_39] : memref<16x16xbf16, #tpu.memory_space<vmem>>, vector<16x16xbf16>
    %cst_40 = arith.constant dense<0.000000e+00> : vector<16x256xf32>
    %119 = tpu.matmul %118, %117, %cst_40 {dimension_numbers = #tpu.dot_dimension_numbers<[1], [0], [0], [1], [0, 0, 1, 1], [], []>} : vector<16x16xbf16>, vector<16x256xbf16>, vector<16x256xf32> -> vector<16x256xf32>
    %c0_41 = arith.constant 0 : index
    %c0_42 = arith.constant 0 : index
    %120 = vector.load %arg13[%c0_41, %c0_42] : memref<16x1xf32, #tpu.memory_space<vmem>>, vector<16x1xf32>
    %121 = vector.broadcast %120 : vector<16x1xf32> to vector<16x256xf32>
    %122 = arith.addf %119, %121 : vector<16x256xf32>
    %cst_43 = arith.constant 0.000000e+00 : f32
    %123 = vector.broadcast %cst_43 : f32 to vector<16x256xf32>
    %124 = arith.subf %123, %122 : vector<16x256xf32>
    %125 = math.exp %124 : vector<16x256xf32>
    %cst_44 = arith.constant 1.000000e+00 : f32
    %126 = vector.broadcast %cst_44 : f32 to vector<16x256xf32>
    %127 = arith.addf %126, %125 : vector<16x256xf32>
    %128 = tpu.reciprocal %127 {approx = true} : vector<16x256xf32> -> vector<16x256xf32>
    %129 = arith.mulf %122, %128 : vector<16x256xf32>
    %c0_45 = arith.constant 0 : index
    %c0_46 = arith.constant 0 : index
    %130 = vector.load %arg14[%c0_45, %c0_46] : memref<16x256xf32, #tpu.memory_space<vmem>>, vector<16x256xf32>
    tpu.vector_store %arg14[%c0_45, %c0_46], %129 {strides = array<i32>} : memref<16x256xf32, #tpu.memory_space<vmem>>, vector<16x256xf32>,
    return
  }
  func.func @transform_0(%arg0: i32) -> (i32, i32) {
    %c0_i32 = arith.constant 0 : i32
    %c0_i32_0 = arith.constant 0 : i32
    return %c0_i32, %arg0 : i32, i32
  }
  func.func @transform_1(%arg0: i32) -> (i32, i32) {
    %c0_i32 = arith.constant 0 : i32
    %c0_i32_0 = arith.constant 0 : i32
    %c0_i32_1 = arith.constant 0 : i32
    return %c0_i32, %c0_i32_0 : i32, i32
  }
  func.func @transform_2(%arg0: i32) -> (i32, i32) {
    %c0_i32 = arith.constant 0 : i32
    %c0_i32_0 = arith.constant 0 : i32
    %c0_i32_1 = arith.constant 0 : i32
    return %c0_i32, %c0_i32_0 : i32, i32
  }
  func.func @transform_3(%arg0: i32) -> (i32, i32) {
    %c0_i32 = arith.constant 0 : i32
    %c0_i32_0 = arith.constant 0 : i32
    %c0_i32_1 = arith.constant 0 : i32
    return %c0_i32, %c0_i32_0 : i32, i32
  }
  func.func @transform_4(%arg0: i32) -> (i32, i32) {
    %c0_i32 = arith.constant 0 : i32
    %c0_i32_0 = arith.constant 0 : i32
    %c0_i32_1 = arith.constant 0 : i32
    return %c0_i32, %c0_i32_0 : i32, i32
  }
  func.func @transform_5(%arg0: i32) -> (i32, i32, i32) {
    %c0_i32 = arith.constant 0 : i32
    %c0_i32_0 = arith.constant 0 : i32
    %c0_i32_1 = arith.constant 0 : i32
    %c0_i32_2 = arith.constant 0 : i32
    return %c0_i32, %c0_i32_0, %c0_i32_1 : i32, i32, i32
  }
  func.func @transform_6(%arg0: i32) -> (i32, i32, i32) {
    %c0_i32 = arith.constant 0 : i32
    %c0_i32_0 = arith.constant 0 : i32
    %c0_i32_1 = arith.constant 0 : i32
    %c0_i32_2 = arith.constant 0 : i32
    return %c0_i32, %c0_i32_0, %c0_i32_1 : i32, i32, i32
  }
  func.func @transform_7(%arg0: i32) -> (i32, i32, i32) {
    %c0_i32 = arith.constant 0 : i32
    %c0_i32_0 = arith.constant 0 : i32
    %c0_i32_1 = arith.constant 0 : i32
    %c0_i32_2 = arith.constant 0 : i32
    return %c0_i32, %c0_i32_0, %c0_i32_1 : i32, i32, i32
  }
  func.func @transform_8(%arg0: i32) -> (i32, i32, i32) {
    %c0_i32 = arith.constant 0 : i32
    %c0_i32_0 = arith.constant 0 : i32
    %c0_i32_1 = arith.constant 0 : i32
    %c0_i32_2 = arith.constant 0 : i32
    return %c0_i32, %c0_i32_0, %c0_i32_1 : i32, i32, i32
  }
  func.func @transform_9(%arg0: i32) -> (i32, i32) {
    %c0_i32 = arith.constant 0 : i32
    %c0_i32_0 = arith.constant 0 : i32
    %c0_i32_1 = arith.constant 0 : i32
    return %c0_i32, %c0_i32_0 : i32, i32
  }
  func.func @transform_10(%arg0: i32) -> (i32, i32) {
    %c0_i32 = arith.constant 0 : i32
    %c0_i32_0 = arith.constant 0 : i32
    %c0_i32_1 = arith.constant 0 : i32
    return %c0_i32, %c0_i32_0 : i32, i32
  }
  func.func @transform_11(%arg0: i32) -> (i32, i32) {
    %c0_i32 = arith.constant 0 : i32
    %c0_i32_0 = arith.constant 0 : i32
    %c0_i32_1 = arith.constant 0 : i32
    return %c0_i32, %c0_i32_0 : i32, i32
  }
  func.func @transform_12(%arg0: i32) -> (i32, i32) {
    %c0_i32 = arith.constant 0 : i32
    %c0_i32_0 = arith.constant 0 : i32
    %c0_i32_1 = arith.constant 0 : i32
    return %c0_i32, %c0_i32_0 : i32, i32
  }
  func.func @transform_13(%arg0: i32) -> (i32, i32) {
    %c0_i32 = arith.constant 0 : i32
    %c0_i32_0 = arith.constant 0 : i32
    return %c0_i32, %arg0 : i32, i32
  }
}

</mosaic_0001>

<bundles_post_ra>
// kernel: tpu_custom_call.1
= control target key start
LH: loop header
LB: loop body
LE: loop exit
PB: predicated region body
PF: predicated region fallthrough
CT: control target
= control target key end

     0   :  { %s1562_s0 = inlined_call_operand.hbm [shape: f32[16,512], index: 0, kind: input, shape index: {}]   ;;  %s1563_s1 = inlined_call_operand.vmem [shape: f32[9,256], index: 1, kind: input, shape index: {}]   ;;  %s1564_s2 = inlined_call_operand.vmem [shape: bf16[16,16], index: 2, kind: input, shape index: {}]   ;;  %s1565_s3 = inlined_call_operand.vmem [shape: f32[8,1], index: 3, kind: input, shape index: {}]   ;;  %s1566_s4 = inlined_call_operand.vmem [shape: f32[8,1], index: 4, kind: input, shape index: {}]   ;;  %s1567_s5 = inlined_call_operand.vmem [shape: bf16[1,8,8], index: 5, kind: input, shape index: {}]   ;;  %s1568_s6 = inlined_call_operand.vmem [shape: f32[1,8,1], index: 6, kind: input, shape index: {}]   ;;  %s1569_s7 = inlined_call_operand.vmem [shape: bf16[1,8,72], index: 7, kind: input, shape index: {}]   ;;  %s1570_s8 = inlined_call_operand.vmem [shape: f32[1,8,1], index: 8, kind: input, shape index: {}]   ;;  %s1571_s9 = inlined_call_operand.vmem [shape: bf16[8,8], index: 9, kind: input, shape index: {}]   ;;  %s1572_s10 = inlined_call_operand.vmem [shape: f32[8,1], index: 10, kind: input, shape index: {}]   ;;  %s1573_s11 = inlined_call_operand.vmem [shape: bf16[16,16], index: 11, kind: input, shape index: {}]   ;;  %s1574_s12 = inlined_call_operand.vmem [shape: f32[16,1], index: 12, kind: input, shape index: {}]   ;;  %s1575_s13 = inlined_call_operand.hbm [shape: f32[16,512], index: 13, kind: output, shape index: {}]  }
   0x1   :  { %1584 = sst [smem:[#allocation14_spill]] %s1562_s0 }
   0x2   :  { %1585 = sst [smem:[#allocation15_spill]] %s1575_s13 }
   0x3   :  { %18 = vsyncpa [#allocation3], 0 }
   0x4   :  { %20 = vsyncpa [#allocation3 + $0x1], 0 }
   0x5   :  { %21 = vsyncpa [#allocation4], 0 }
   0x6   :  { %23 = vsyncpa [#allocation4 + $0x1], 0  ;;  %s1304_s25 = smov 0   ;;  %s1306_s26 = smov 0  }
   0x7   :  { %s1308_s27 = smov 0   ;;  %s1310_s28 = smov 0  }
   0x8 LB: > { %1586 = sst [smem:[#allocation8_spill]] %s1206_s25  ;;  %s1325_s29 = sadd.s32 4294967295, %s1218_s28   ;;  %s1218_s28 = sphi %s1310_s28, %s1602_s28   ;;  %s1214_s27 = sphi %s1308_s27, %s1604_s27   ;;  %s1210_s26 = sphi %s1306_s26, %s1606_s26   ;;  %s1206_s25 = sphi %s1304_s25, %s1605_s25  }
   0x9   : > { %1587 = sst [smem:[#allocation9_spill]] %s1214_s27  ;;  %s981_s30 = sadd.s32 4294967294, %s1218_s28  }
   0xa   : > { %s1329_s14 = sadd.s32 1, %s1218_s28   ;;  %s36_s15 = sadd.s32 1, %s1214_s27 }
   0xb   : > { %1588 = sst [smem:[#allocation10_spill]] %s1329_s14  ;;  %s33_s16 = ssub.s32 %s1218_s28, %s1329_s14 }
   0xc   : > { %p43_p0 = scmp.ne.s32.totalorder %s1214_s27, %s1210_s26  ;;  %p34_p1 = scmp.eq.s32.totalorder %s33_s16, 0 }
   0xd   : > { %p44_p2 = scmp.eq.s32.totalorder %s1218_s28, 0  ;;  %p49_p3 = scmp.ne.s32.totalorder %s1210_s26, %s1206_s25 }
   0xe   : > { %p50_p4 = scmp.eq.s32.totalorder %s1325_s29, 0  ;;  %p325_p7 = scmp.eq.s32.totalorder %s1325_s29, 1 }
   0xf   : > { %s1341_s17 = scalar_select %p34_p1, %s1214_s27, %s36_s15  }
  0x10   : > { %p1343_p5 = por %p44_p2, %p43_p0  ;;  %p1347_p6 = por %p50_p4, %p49_p3 }
  0x11   : > { %1589 = sst [smem:[#allocation11_spill]] %s1341_s17  ;;  %p331_p8 = scmp.eq.s32.totalorder %s981_s30, 1 }
  0x12   : > { %p983_p9 = scmp.ge.s32.totalorder %s1218_s28, 2  ;;  %p1029_p10 = scmp.lt.s32.totalorder %s1218_s28, 2 }
  0x13   : > { %p1354_p11 = por %p325_p7, %p43_p0  ;;  %p1358_p12 = por %p331_p8, %p49_p3 }
  0x14   : > { %s387_s22 = sand.u32 1, %s1214_s27   ;;  %s1013_s23 = sshll.u32 %s1218_s28, 4 }
  0x15   : > { %s1592_s20 = scalar_select %p1354_p11, 1, 0 }
  0x16   : > { %s1594_s21 = scalar_select %p1358_p12, 1, 0 }
  0x17   : > { %1593 = sst [smem:[#allocation12_spill]] %s1592_s20  ;;  %s984_s24 = sshll.u32 %s387_s22, 5 }
  0x18   : > { %1595 = sst [smem:[#allocation13_spill]] %s1594_s21  ;;  %s391_s25 = scalar_lea.vmem [#allocation2], %s984_s24 }
  0x19   : > { %s1596_s0 = sld [smem:[#allocation14_spill]]  ;;  %s399_s30 = sshll.u32 %s391_s25, 4  ;;  %s400_s30 = int_to_ptr.vmem [resolvable:$true] %s399_s30 }
  0x1a   : > { %p1369_p13 = pnand %p1029_p10, %p1343_p5  ;;  %p987_p0 = scmp.ge.s32.totalorder %s1218_s28, 1 }
  0x1b   : > { %s388_s21 = scalar_lea.sflag [#allocation3], %s387_s22 }
  0x1c   : > { %p1126_p2 = pneg %p1369_p13 }
  0x1f   : > { %s396_s17 = scalar_lea.hbm %s1596_s0, %s1013_s23  ;;  %s1129_s23 = scalar_lea.hbm %s1596_s0, 64 }
  0x20   : > { %s397_s14 = sshll.u32 %s396_s17, 4  ;;  %s398_s14 = int_to_ptr.hbm [resolvable:$true] %s397_s14 }
  0x21   : > { %s1122_s27 = sshra.s32 %s398_s14, 4  ;;  %s1123_s27 = int_to_ptr.hbm [resolvable:$true] %s1122_s27 }
  0x22   : > { %s1124_s20 = scalar_lea.hbm %s1123_s27, 32  ;;  %p1130_p5 = scmp.lt.s32.totalorder %s1123_s27, %s1596_s0 }
  0x23   : > { %p1125_p1 = scmp.ne.s32.totalorder %s1123_s27, %s1124_s20  ;;  %p1131_p7 = scmp.lt.s32.totalorder %s1129_s23, %s1124_s20 }
  0x25   : > { %p1127_p3 = pnand %p1126_p2, %p1125_p1  ;;  %p1132_p8 = por %p1131_p7, %p1130_p5 }
  0x27   : > { %p1128_p4 = pneg %p1127_p3 }
  0x29   : > { %p1133_p10 = pnand %p1132_p8, %p1128_p4 }
  0x2b   : > { %1136 = shalt.err (!%p1133_p10)
}
  0x2c   : > { %s1220_s22 = smov 512   ;;  %s1221_s15 = smov 256  }
  0x2d   : > { %s1222_s16 = smov 16   ;;  %p407_p1 = scmp.lt.s32.totalorder %s1218_s28, 3 }
  0x2e   : > { %1024 = dma.hbm_to_vmem [thread:$0]  (!%p1369_p13), %s398_s14, 512, %s400_s30, %s388_s21, %s1220_s22, %s1221_s15, %s1222_s16  }
  0x2f   : > { %p408_p2 = pnand %p987_p0, %p407_p1 }
  0x30   : > { %s1388_s17 = sand.u32 (!%p408_p2), 1, %s1210_s26  }
  0x31   : > { %411 = sbr.rel (%p408_p2) target bundleno = 1008 (0x3f0), region = 72  ;;  %s988_s27 = sshll.u32 (!%p408_p2), %s1388_s17, 5 }
  0x32   : > { %s414_s20 = scalar_lea.sflag (!%p408_p2), [#allocation3], %s1388_s17  ;;  %s417_s25 = scalar_lea.vmem (!%p408_p2), [#allocation2], %s988_s27 }
  0x36   : > { %1197 = dma.done.wait (%p1347_p6), %s414_s20, 512  }
  0x37   : > { %1199 = vsyncadd (%p1347_p6), %s414_s20, 4294966784  ;;  %v1223_v0 = vmov 0   ;;  %v464_v1 = vld [vmem:[%s417_s25] sm:$0xff]  ;;  %v466_v2 = vld [vmem:[%s417_s25 + $0x10] sm:$0xff]  ;;  %vm481_vm0 = vcmask 130048   ;;  %vm560_vm1 = vcmask 1043456   ;;  %v609_v55 = vlaneseq }
  0x38   : > { %1077 = vset.pattern.permute.xlu0 %v1223_v0  ;;  %1078 = vset.pattern.permute.xlu1 %v1223_v0  ;;  %v465_v3 = vld [vmem:[%s417_s25 + $0x8] sm:$0xff]  ;;  %v474_v4 = vpack.c.bf16 %v466_v2, %v464_v1  ;;  %v467_v5 = vld [vmem:[%s417_s25 + $0x18] sm:$0xff]  ;;  %v513_v6 = vld [vmem:[%s1565_s3] sm:$0xff]  ;;  %vm556_vm2 = vcmask 64512   ;;  %s1224_s22 = smov 112   ;;  %s1225_s15 = smov 113  }
  0x39   : > { %1079 = vset.pattern.permute.xlu2 %v1223_v0  ;;  %v475_v7 = vpack.c.bf16 %v467_v5, %v465_v3  ;;  %v1014_v8 = vld [vmem:[%s1564_s2] sm:$0xff]  ;;  %516 = vperm.xlu0 %1077, %v513_v6   ;;  %s1226_s16 = smov 111   ;;  %s1227_s20 = smov 127   ;;  %v1455_v58 = vand.u32 127, %v609_v55  ;;  %v1080_v60 = vld [vmem:[%s1563_s1 + $0x10] ss:$0 sm:$0xff] }
  0x3a   : > { %492 = vmatpush.bf16.msra.mxu0 %v474_v4  ;;  %v550_v9 = vld [vmem:[%s1568_s6] sm:$0xff]  ;;  %s1228_s25 = smov 1   ;;  %s1229_s13 = smov 17   ;;  %v1081_v61 = vld [vmem:[%s1563_s1 + $0x18] ss:$0 sm:$0xff]  ;;  %v1472_v2 = vld [vmem:[%s1563_s1 + $0x8] sm:$0xff] }
  0x3b   : > { %506 = vmatpush.bf16.msra.mxu1 %v475_v7  ;;  %v547_v31 = vld [vmem:[%s1567_s5] sm:$0xf]  ;;  %s1230_s14 = smov 15   ;;  %s1231_s18 = smov 16   ;;  %vm688_vm3 = vcmp.lt.s32.totalorder %v1455_v58, 111  ;;  %vm666_vm4 = vcmp.lt.s32.totalorder %v1455_v58, 113 }
  0x3c   : > { %v706_v51 = vld [vmem:[%s1570_s8] sm:$0xff]  ;;  %vm655_vm5 = vcmp.lt.s32.totalorder %v1455_v58, 127  ;;  %vm677_vm6 = vcmp.lt.s32.totalorder %v1455_v58, 112  ;;  %vm633_vm7 = vcmp.lt.s32.totalorder %v1455_v58, 15  ;;  %vm644_vm8 = vcmp.lt.s32.totalorder %v1455_v58, 1  ;;  %s1016_s21 = sshll.u32 %s1325_s29, 4 }
  0x3d   : > { %994 = vmatmul.msk.bf16.vlgmr.msra.gmra.mxu0 %vm481_vm0, %v1014_v8  ;;  %v816_v52 = vld [vmem:[%s1574_s12] sm:$0xff]  ;;  %vm611_vm9 = vcmp.lt.s32.totalorder %v1455_v58, 17  ;;  %vm622_vm10 = vcmp.lt.s32.totalorder %v1455_v58, 16  ;;  %vm712_vm11 = vcmask 588800   ;;  %s460_s30 = scalar_lea.vmem [#allocation5], %s988_s27  ;;  %s1598_s24 = sld [smem:[#allocation15_spill]] }
  0x3e   : > { %995 = vmatmul.msk.bf16.vlgmr.msra.gmra.mxu1 %vm481_vm0, %v1014_v8  ;;  %v533_v53 = vld [vmem:[%s1566_s4] sm:$0xff]  ;;  %s893_s29 = scalar_lea.sflag [#allocation4], %s1388_s17 }
  0x3f   : > { %v1467_v1 = vld [vmem:[%s1563_s1] sm:$0xff] }
  0x40   : > { %v669_v8 = vperm.slane %v1467_v1, 6  ;;  %v705_v58 = vld [vmem:[%s1569_s7] sm:$0xf] }
  0x41   : > { %553 = vperm.xlu0 %1077, %v550_v9   ;;  %v670_v9 = vperm.slane %v1472_v2, 6 }
  0xab   : > { %v517_v10 = vpop.permute.xlu0 %516 }
  0xb3   : > { %v554_v32 = vpop.permute.xlu0 %553 }
  0xba   : > { %v494_v11 = vpop.f32.mrf.mxu0 }
  0xbb   : > { %v519_v12 = vadd.f32 %v517_v10, %v494_v11  ;;  %v508_v13 = vpop.f32.mrf.mxu1 }
  0xbc   : > { %v520_v14 = vadd.f32 %v517_v10, %v508_v13  ;;  %v680_v13 = vperm.slane %v1467_v1, 7 }
  0xbd   : > { %v521_v15 = vsub.f32 0.0, %v519_v12 }
  0xbe   : > { %v522_v16 = vsub.f32 0.0, %v520_v14 }
  0xbf   : > { %v523_v17 = vmul.f32 1.442695, %v521_v15 }
  0xc0   : > { %v525_v18 = vmul.f32 1.442695, %v522_v16 }
  0xc1   : > { %1082 = vpow2.f32 %v523_v17  ;;  %v658_v17 = vperm.slane %v1467_v1, 5 }
  0xc2   : > { %1084 = vpow2.f32 %v525_v18  ;;  %v659_v18 = vperm.slane %v1472_v2, 5 }
  0xc7   : > { %v1083_v19 = vpop.eup %1082 }
  0xc8   : > { %v1085_v20 = vpop.eup %1084  ;;  %v527_v21 = vadd.f32 1.0, %v1083_v19 }
  0xc9   : > { %v528_v22 = vadd.f32 1.0, %v1085_v20 }
  0xca   : > { %1086 = vrcp.f32 %v527_v21 }
  0xcb   : > { %1088 = vrcp.f32 %v528_v22 }
  0xd0   : > { %v1087_v23 = vpop.eup %1086 }
  0xd1   : > { %v1089_v24 = vpop.eup %1088  ;;  %v1409_v25 = vmul.f32 %v1087_v23, %v519_v12 }
  0xd2   : > { %v1411_v26 = vmul.f32 %v1089_v24, %v520_v14  ;;  %v681_v14 = vperm.slane %v1472_v2, 7 }
  0xd3   : > { %v548_v27 = vpack.c.bf16 %v1409_v25, %v1409_v25 }
  0xd4   : > { %v549_v28 = vpack.c.bf16 %v1411_v26, %v1411_v26 }
  0xd5   : > { %v562_v29 = vsel %vm560_vm1, %v548_v27, 0 }
  0xd6   : > { %574 = vmatpush.bf16.msra.mxu2 %v562_v29  ;;  %v565_v30 = vsel %vm560_vm1, %v549_v28, 0 }
  0xd7   : > { %587 = vmatpush.bf16.msra.mxu3 %v565_v30 }
  0xd9   : > { %996 = vmatmul.msk.bf16.vlgmr.msra.gmra.mxu2 %vm556_vm2, %v547_v31 }
  0xda   : > { %997 = vmatmul.msk.bf16.vlgmr.msra.gmra.mxu3 %vm556_vm2, %v547_v31 }
 0x15c   : > { %v576_v33 = vpop.f32.mrf.mxu2 }
 0x15d   : > { %v577_v34 = vadd.f32 %v576_v33, %v554_v32  ;;  %v589_v35 = vpop.f32.mrf.mxu3 }
 0x15e   : > { %v590_v36 = vadd.f32 %v589_v35, %v554_v32 }
 0x15f   : > { %v593_v37 = vsub.f32 0.0, %v577_v34 }
 0x160   : > { %v594_v38 = vsub.f32 0.0, %v590_v36 }
 0x161   : > { %v595_v39 = vmul.f32 1.442695, %v593_v37 }
 0x162   : > { %v597_v40 = vmul.f32 1.442695, %v594_v38 }
 0x163   : > { %1090 = vpow2.f32 %v595_v39  ;;  %v636_v39 = vperm.slane %v1467_v1, 2 }
 0x164   : > { %v578_v41 = vpop.f32.mrf.mxu2  ;;  %1092 = vpow2.f32 %v597_v40 }
 0x165   : > { %v591_v42 = vpop.f32.mrf.mxu3  ;;  %v637_v41 = vperm.slane %v1472_v2, 2 }
 0x166   : > { %v647_v42 = vperm.slane %v1467_v1, 3 }
 0x169   : > { %v1091_v43 = vpop.eup %1090 }
 0x16a   : > { %v599_v44 = vadd.f32 1.0, %v1091_v43  ;;  %v1093_v45 = vpop.eup %1092  ;;  %v648_v43 = vperm.slane %v1472_v2, 3 }
 0x16b   : > { %v600_v46 = vadd.f32 1.0, %v1093_v45 }
 0x16c   : > { %1094 = vrcp.f32 %v599_v44 }
 0x16d   : > { %1096 = vrcp.f32 %v600_v46 }
 0x172   : > { %v1095_v47 = vpop.eup %1094 }
 0x173   : > { %v1424_v48 = vmul.f32 %v1095_v47, %v577_v34  ;;  %v1097_v49 = vpop.eup %1096 }
 0x174   : > { %v1429_v50 = vmul.f32 %v1097_v49, %v590_v36 }
 0x175   : > { %673 = vrot.lane.b32.xlu0 %v1424_v48, %s1224_s22  ;;  %662 = vrot.lane.b32.xlu2 %v1424_v48, %s1225_s15 }
 0x176   : > { %684 = vrot.lane.b32.xlu1 %v1424_v48, %s1226_s16 }
 0x17d   : > { %653 = vrot.lane.b32.xlu0 %v1429_v50, %s1227_s20  ;;  %664 = vrot.lane.b32.xlu2 %v1429_v50, %s1225_s15 }
 0x17e   : > { %686 = vrot.lane.b32.xlu1 %v1429_v50, %s1226_s16  ;;  %s905_s16 = sshll.u32 %s460_s30, 4  ;;  %s906_s16 = int_to_ptr.vmem [resolvable:$true] %s905_s16 }
 0x185   : > { %640 = vrot.lane.b32.xlu0 %v1424_v48, %s1228_s25  ;;  %651 = vrot.lane.b32.xlu2 %v1424_v48, %s1227_s20 }
 0x186   : > { %675 = vrot.lane.b32.xlu1 %v1429_v50, %s1224_s22  ;;  %s904_s22 = scalar_lea.hbm %s1598_s24, %s1016_s21  ;;  %s1172_s21 = scalar_lea.hbm %s1598_s24, 64 }
 0x187   : > { %s907_s20 = sshll.u32 %s904_s22, 4  ;;  %s908_s20 = int_to_ptr.hbm [resolvable:$true] %s907_s20 }
 0x188   : > { %s1166_s27 = sshra.s32 %s908_s20, 4  ;;  %s1167_s27 = int_to_ptr.hbm [resolvable:$true] %s1166_s27 }
 0x189   : > { %p1173_p3 = scmp.lt.s32.totalorder %s1167_s27, %s1598_s24 }
 0x18d   : > { %607 = vrot.lane.b32.xlu0 %v1429_v50, %s1229_s13  ;;  %631 = vrot.lane.b32.xlu2 %v1429_v50, %s1230_s14 }
 0x18e   : > { %629 = vrot.lane.b32.xlu1 %v1424_v48, %s1230_s14 }
 0x195   : > { %709 = vperm.xlu0 %1077, %v706_v51   ;;  %605 = vrot.lane.b32.xlu2 %v1424_v48, %s1229_s13 }
 0x196   : > { %642 = vrot.lane.b32.xlu1 %v1429_v50, %s1228_s25  ;;  %s1168_s25 = scalar_lea.hbm %s1167_s27, 32 }
 0x197   : > { %p1169_p6 = scmp.ne.s32.totalorder %s1167_s27, %s1168_s25  ;;  %p1174_p4 = scmp.lt.s32.totalorder %s1172_s21, %s1168_s25 }
 0x199   : > { %p1170_p13 = pnand %p1169_p6, %p1354_p11  ;;  %p1175_p5 = por %p1174_p4, %p1173_p3 }
 0x19b   : > { %p1171_p0 = pneg %p1170_p13 }
 0x19d   : > { %820 = vperm.xlu0 %1077, %v816_v52   ;;  %620 = vrot.lane.b32.xlu2 %v1429_v50, %s1231_s18  ;;  %p1176_p7 = pnand %p1175_p5, %p1171_p0 }
 0x19e   : > { %618 = vrot.lane.b32.xlu1 %v1424_v48, %s1231_s18 }
 0x1a6   : > { %536 = vperm.xlu1 %1078, %v533_v53  }
 0x1cf   : > { %v663_v54 = vpop.permute.xlu2 %662 }
 0x1d7   : > { %v665_v56 = vpop.permute.xlu2 %664 }
 0x1d8   : > { %v667_v15 = vsel %vm666_vm4, %v663_v54, %v665_v56  ;;  %v668_v16 = vsel %vm666_vm4, %v665_v56, %v663_v54  ;;  %v614_v56 = vperm.slane %v1467_v1, 0 }
 0x1d9   : > { %v671_v24 = vmul.f32 %v669_v8, %v667_v15  ;;  %v672_v27 = vmul.f32 %v670_v9, %v668_v16  ;;  %v817_v16 = vld [vmem:[%s1574_s12 + $0x8] sm:$0xff] }
 0x1da   : > { %825 = vperm.xlu1 %1078, %v817_v16  }
 0x1df   : > { %v652_v3 = vpop.permute.xlu2 %651 }
 0x1e7   : > { %v674_v59 = vpop.permute.xlu0 %673  ;;  %v632_v30 = vpop.permute.xlu2 %631 }
 0x1e8   : > { %v685_v57 = vpop.permute.xlu1 %684 }
 0x1ef   : > { %v654_v10 = vpop.permute.xlu0 %653  ;;  %v606_v40 = vpop.permute.xlu2 %605 }
 0x1f0   : > { %v687_v62 = vpop.permute.xlu1 %686  ;;  %v656_v20 = vsel %vm655_vm5, %v652_v3, %v654_v10  ;;  %v657_v21 = vsel %vm655_vm5, %v654_v10, %v652_v3 }
 0x1f1   : > { %v689_v63 = vsel %vm688_vm3, %v685_v57, %v687_v62  ;;  %v690_v0 = vsel %vm688_vm3, %v687_v62, %v685_v57  ;;  %v660_v31 = vmul.f32 %v658_v17, %v656_v20  ;;  %v661_v32 = vmul.f32 %v659_v18, %v657_v21  ;;  %v765_v17 = vld [vmem:[%s1572_s10] sm:$0xff] }
 0x1f2   : > { %v693_v4 = vmul.f32 %v1080_v60, %v689_v63  ;;  %v694_v5 = vmul.f32 %v1081_v61, %v690_v0  ;;  %v615_v57 = vperm.slane %v1472_v2, 0  ;;  %v626_v60 = vperm.slane %v1472_v2, 1  ;;  %v510_v2 = vpop.f32.mrf.mxu1  ;;  %768 = vperm.xlu2 %1079, %v765_v17  }
 0x1f3   : > { %v699_v36 = vpack.c.bf16 %v660_v31, %v1424_v48  ;;  %v700_v37 = vpack.c.bf16 %v661_v32, %v1429_v50 }
 0x1f4   : > { %v703_v6 = vpack.c.bf16 %v693_v4, %v693_v4  ;;  %v704_v7 = vpack.c.bf16 %v694_v5, %v694_v5 }
 0x1f6   : > { %v717_v11 = vsel %vm560_vm1, %v703_v6, 0  ;;  %v720_v12 = vsel %vm560_vm1, %v704_v7, 0 }
 0x1f7   : > { %725 = vmatpush.bf16.msrb.mxu0 %v717_v11  ;;  %738 = vmatpush.bf16.msrb.mxu1 %v720_v12  ;;  %v641_v38 = vpop.permute.xlu0 %640  ;;  %v621_v63 = vpop.permute.xlu2 %620 }
 0x1f8   : > { %v676_v19 = vpop.permute.xlu1 %675 }
 0x1f9   : > { %v678_v22 = vsel %vm677_vm6, %v674_v59, %v676_v19  ;;  %v679_v23 = vsel %vm677_vm6, %v676_v19, %v674_v59  ;;  %v625_v59 = vperm.slane %v1467_v1, 1  ;;  %v496_v1 = vpop.f32.mrf.mxu0 }
 0x1fa   : > { %v682_v28 = vmul.f32 %v680_v13, %v678_v22  ;;  %v683_v29 = vmul.f32 %v681_v14, %v679_v23 }
 0x1fc   : > { %v701_v33 = vpack.c.bf16 %v682_v28, %v671_v24  ;;  %v702_v34 = vpack.c.bf16 %v683_v29, %v672_v27 }
 0x1fe   : > { %726 = vmatpush.bf16.msrb.mxu0 %v701_v33  ;;  %739 = vmatpush.bf16.msrb.mxu1 %v702_v34 }
 0x1ff   : > { %v608_v53 = vpop.permute.xlu0 %607 }
 0x200   : > { %v630_v35 = vpop.permute.xlu1 %629  ;;  %v612_v61 = vsel %vm611_vm9, %v606_v40, %v608_v53  ;;  %v613_v62 = vsel %vm611_vm9, %v608_v53, %v606_v40  ;;  %v762_v40 = vld [vmem:[%s1571_s9] sm:$0xf] }
 0x201   : > { %v634_v44 = vsel %vm633_vm7, %v630_v35, %v632_v30  ;;  %v635_v45 = vsel %vm633_vm7, %v632_v30, %v630_v35  ;;  %v616_v5 = vmul.f32 %v614_v56, %v613_v62  ;;  %v617_v6 = vmul.f32 %v615_v57, %v612_v61  ;;  %v1015_v57 = vld [vmem:[%s1573_s11] sm:$0xff] }
 0x202   : > { %727 = vmatpush.bf16.msrb.mxu0 %v699_v36  ;;  %740 = vmatpush.bf16.msrb.mxu1 %v700_v37  ;;  %v638_v49 = vmul.f32 %v636_v39, %v635_v45  ;;  %v639_v50 = vmul.f32 %v637_v41, %v634_v44 }
 0x207   : > { %v710_v11 = vpop.permute.xlu0 %709 }
 0x208   : > { %v643_v46 = vpop.permute.xlu1 %642 }
 0x209   : > { %v645_v47 = vsel %vm644_vm8, %v641_v38, %v643_v46  ;;  %v646_v48 = vsel %vm644_vm8, %v643_v46, %v641_v38 }
 0x20a   : > { %v649_v51 = vmul.f32 %v647_v42, %v646_v48  ;;  %v650_v52 = vmul.f32 %v648_v43, %v645_v47 }
 0x20c   : > { %v697_v54 = vpack.c.bf16 %v649_v51, %v638_v49  ;;  %v698_v55 = vpack.c.bf16 %v650_v52, %v639_v50 }
 0x20e   : > { %728 = vmatpush.bf16.msrb.mxu0 %v697_v54  ;;  %741 = vmatpush.bf16.msrb.mxu1 %v698_v55 }
 0x20f   : > { %v821_v61 = vpop.permute.xlu0 %820 }
 0x210   : > { %v619_v0 = vpop.permute.xlu1 %618 }
 0x211   : > { %v623_v3 = vsel %vm622_vm10, %v619_v0, %v621_v63  ;;  %v624_v4 = vsel %vm622_vm10, %v621_v63, %v619_v0 }
 0x212   : > { %v627_v7 = vmul.f32 %v625_v59, %v624_v4  ;;  %v628_v8 = vmul.f32 %v626_v60, %v623_v3 }
 0x214   : > { %v695_v9 = vpack.c.bf16 %v627_v7, %v616_v5  ;;  %v696_v10 = vpack.c.bf16 %v628_v8, %v617_v6 }
 0x216   : > { %729 = vmatpush.bf16.msrb.mxu0 %v695_v9  ;;  %742 = vmatpush.bf16.msrb.mxu1 %v696_v10 }
 0x218   : > { %v537_v41 = vpop.permute.xlu1 %536 }
 0x219   : > { %998 = vmatmul.msk.bf16.vlgmr.msrb.gmra.mxu0 %vm712_vm11, %v705_v58  ;;  %999 = vmatmul.msk.bf16.vlgmr.msrb.gmra.mxu1 %vm712_vm11, %v705_v58  ;;  %v540_v42 = vadd.f32 %v537_v41, %v510_v2 }
 0x21b   : > { %v544_v47 = vmul.f32 0.1, %v540_v42  ;;  %vm542_vm13 = vcmp.ge.f32.partialorder %v540_v42, 0.0 }
 0x21d   : > { %v546_v53 = vsel %vm542_vm13, %v540_v42, %v544_v47 }
 0x24c   : > { %v826_v8 = vpop.permute.xlu1 %825 }
 0x296   : > { %v731_v12 = vpop.f32.mrf.mxu0  ;;  %v744_v13 = vpop.f32.mrf.mxu1 }
 0x297   : > { %v732_v14 = vadd.f32 %v731_v12, %v710_v11  ;;  %v745_v15 = vadd.f32 %v744_v13, %v710_v11 }
 0x299   : > { %v748_v18 = vsub.f32 0.0, %v732_v14  ;;  %v749_v19 = vsub.f32 0.0, %v745_v15 }
 0x29b   : > { %v750_v20 = vmul.f32 1.442695, %v748_v18  ;;  %v752_v21 = vmul.f32 1.442695, %v749_v19 }
 0x29d   : > { %1098 = vpow2.f32 %v750_v20 }
 0x29e   : > { %1100 = vpow2.f32 %v752_v21  ;;  %v733_v22 = vpop.f32.mrf.mxu0  ;;  %v746_v23 = vpop.f32.mrf.mxu1 }
 0x2a3   : > { %v1099_v24 = vpop.eup %1098 }
 0x2a4   : > { %v1101_v27 = vpop.eup %1100  ;;  %v754_v28 = vadd.f32 1.0, %v1099_v24 }
 0x2a5   : > { %v755_v29 = vadd.f32 1.0, %v1101_v27 }
 0x2a6   : > { %1102 = vrcp.f32 %v754_v28 }
 0x2a7   : > { %1104 = vrcp.f32 %v755_v29 }
 0x2ac   : > { %v1103_v30 = vpop.eup %1102 }
 0x2ad   : > { %v1105_v31 = vpop.eup %1104  ;;  %v758_v32 = vmul.f32 %v1103_v30, %v732_v14 }
 0x2ae   : > { %v759_v33 = vmul.f32 %v1105_v31, %v745_v15 }
 0x2af   : > { %v760_v34 = vadd.f32 %v758_v32, %v1409_v25  ;;  %v539_v25 = vadd.f32 %v537_v41, %v496_v1 }
 0x2b0   : > { %v761_v35 = vadd.f32 %v759_v33, %v1411_v26  ;;  %v769_v26 = vpop.permute.xlu2 %768 }
 0x2b1   : > { %v763_v36 = vpack.c.bf16 %v760_v34, %v760_v34  ;;  %v543_v44 = vmul.f32 0.1, %v539_v25  ;;  %vm541_vm12 = vcmp.ge.f32.partialorder %v539_v25, 0.0 }
 0x2b2   : > { %v764_v37 = vpack.c.bf16 %v761_v35, %v761_v35 }
 0x2b3   : > { %v775_v38 = vsel %vm560_vm1, %v763_v36, 0  ;;  %v545_v51 = vsel %vm541_vm12, %v539_v25, %v543_v44 }
 0x2b4   : > { %787 = vmatpush.bf16.msrb.mxu2 %v775_v38  ;;  %v778_v39 = vsel %vm560_vm1, %v764_v37, 0 }
 0x2b5   : > { %800 = vmatpush.bf16.msrb.mxu3 %v778_v39 }
 0x2b7   : > { %1000 = vmatmul.msk.bf16.vlgmr.msrb.gmra.mxu2 %vm556_vm2, %v762_v40 }
 0x2b8   : > { %1001 = vmatmul.msk.bf16.vlgmr.msrb.gmra.mxu3 %vm556_vm2, %v762_v40 }
 0x33a   : > { %v789_v43 = vpop.f32.mrf.mxu2 }
 0x33b   : > { %v802_v45 = vpop.f32.mrf.mxu3  ;;  %v790_v46 = vadd.f32 %v789_v43, %v769_v26 }
 0x33c   : > { %v803_v48 = vadd.f32 %v802_v45, %v769_v26 }
 0x33d   : > { %vm806_vm14 = vcmp.ge.f32.partialorder %v790_v46, 0.0  ;;  %v808_v49 = vmul.f32 0.1, %v790_v46 }
 0x33e   : > { %vm807_vm15 = vcmp.ge.f32.partialorder %v803_v48, 0.0  ;;  %v809_v50 = vmul.f32 0.1, %v803_v48 }
 0x33f   : > { %v810_v52 = vsel %vm806_vm14, %v790_v46, %v808_v49 }
 0x340   : > { %v811_v54 = vsel %vm807_vm15, %v803_v48, %v809_v50  ;;  %v812_v55 = vpack.c.bf16 %v545_v51, %v810_v52 }
 0x341   : > { %v813_v56 = vpack.c.bf16 %v546_v53, %v811_v54 }
 0x342   : > { %v791_v59 = vpop.f32.mrf.mxu2  ;;  %843 = vmatpush.bf16.msra.mxu2 %v812_v55 }
 0x343   : > { %v804_v60 = vpop.f32.mrf.mxu3  ;;  %857 = vmatpush.bf16.msra.mxu3 %v813_v56 }
 0x345   : > { %1006 = vmatmul.msk.bf16.vlgmr.msra.gmra.mxu2 %vm481_vm0, %v1015_v57 }
 0x346   : > { %1007 = vmatmul.msk.bf16.vlgmr.msra.gmra.mxu3 %vm481_vm0, %v1015_v57 }
 0x3c8   : > { %v845_v62 = vpop.f32.mrf.mxu2 }
 0x3c9   : > { %v846_v63 = vadd.f32 %v845_v62, %v821_v61  ;;  %v859_v0 = vpop.f32.mrf.mxu3 }
 0x3ca   : > { %v860_v3 = vadd.f32 %v859_v0, %v821_v61 }
 0x3cb   : > { %v864_v4 = vsub.f32 0.0, %v846_v63 }
 0x3cc   : > { %v865_v5 = vsub.f32 0.0, %v860_v3 }
 0x3cd   : > { %v868_v6 = vmul.f32 1.442695, %v864_v4 }
 0x3ce   : > { %v870_v7 = vmul.f32 1.442695, %v865_v5 }
 0x3cf   : > { %1106 = vpow2.f32 %v868_v6 }
 0x3d0   : > { %1108 = vpow2.f32 %v870_v7  ;;  %v847_v9 = vpop.f32.mrf.mxu2 }
 0x3d1   : > { %v848_v10 = vadd.f32 %v847_v9, %v826_v8  ;;  %v861_v58 = vpop.f32.mrf.mxu3 }
 0x3d2   : > { %v862_v1 = vadd.f32 %v861_v58, %v826_v8 }
 0x3d3   : > { %v866_v2 = vsub.f32 0.0, %v848_v10 }
 0x3d4   : > { %v867_v11 = vsub.f32 0.0, %v862_v1 }
 0x3d5   : > { %v1107_v12 = vpop.eup %1106  ;;  %v872_v13 = vmul.f32 1.442695, %v866_v2 }
 0x3d6   : > { %v1109_v14 = vpop.eup %1108  ;;  %v876_v15 = vadd.f32 1.0, %v1107_v12  ;;  %v874_v16 = vmul.f32 1.442695, %v867_v11 }
 0x3d7   : > { %v877_v17 = vadd.f32 1.0, %v1109_v14  ;;  %1110 = vpow2.f32 %v872_v13 }
 0x3d8   : > { %1112 = vrcp.f32 %v876_v15 }
 0x3d9   : > { %1114 = vrcp.f32 %v877_v17 }
 0x3da   : > { %1116 = vpow2.f32 %v874_v16 }
 0x3dd   : > { %v1111_v18 = vpop.eup %1110 }
 0x3de   : > { %v1113_v19 = vpop.eup %1112  ;;  %v878_v20 = vadd.f32 1.0, %v1111_v18 }
 0x3df   : > { %v1115_v21 = vpop.eup %1114  ;;  %v884_v22 = vmul.f32 %v1113_v19, %v846_v63 }
 0x3e0   : > { %v1117_v23 = vpop.eup %1116  ;;  %v885_v24 = vmul.f32 %v1115_v21, %v860_v3  ;;  %1118 = vrcp.f32 %v878_v20 }
 0x3e1   : > { %888 = vst [vmem:[%s460_s30] sm:$0xff] %v884_v22  ;;  %v879_v27 = vadd.f32 1.0, %v1117_v23 }
 0x3e2   : > { %889 = vst [vmem:[%s460_s30 + $0x8] sm:$0xff] %v885_v24 }
 0x3e3   : > { %1120 = vrcp.f32 %v879_v27 }
 0x3e6   : > { %v1119_v28 = vpop.eup %1118 }
 0x3e7   : > { %v886_v29 = vmul.f32 %v1119_v28, %v848_v10 }
 0x3e9   : > { %v1121_v30 = vpop.eup %1120  ;;  %890 = vst [vmem:[%s460_s30 + $0x10] sm:$0xff] %v886_v29 }
 0x3ea   : > { %v887_v31 = vmul.f32 %v1121_v30, %v862_v1 }
 0x3ec   : > { %891 = vst [vmem:[%s460_s30 + $0x18] sm:$0xff] %v887_v31 }
 0x3ed   : > { %1179 = shalt.err (!%p1176_p7)
}
 0x3ee   : > { %s1232_s17 = smov 256   ;;  %s1233_s30 = smov 512  }
 0x3ef   : > { %1019 = dma.vmem_to_hbm [thread:$0]  (%p1354_p11), %s906_s16, 512, %s908_s20, %s893_s29, %s1232_s17, %s1233_s30, %s1231_s18  }
 0x3f0 PF: > { %s1600_s22 = sld [smem:[#allocation8_spill]]  ;;  %p1026_p8 = pnand %p983_p9, %p1358_p12 }
 0x3f2   : > { %p1027_p10 = pneg %p1026_p8 }
 0x3f6   : > { %s922_s13 = sand.u32 1, %s1600_s22  }
 0x3f7   : > { %s923_s27 = scalar_lea.sflag [#allocation4], %s922_s13 }
 0x3f8   : > { %1201 = dma.done.wait (%p1027_p10), %s923_s27, 512  }
 0x3f9   : > { %1203 = vsyncadd (%p1027_p10), %s923_s27, 4294966784  ;;  %s1602_s28 = sld [smem:[#allocation10_spill]]  ;;  %s1605_s25 = smov %s1210_s26 }
 0x3fa   : > { %s1603_s14 = sld [smem:[#allocation9_spill]] }
 0x3fb   : > { %s1604_s27 = sld [smem:[#allocation11_spill]] }
 0x3ff   : > { %p26_p1 = scmp.ge.s32.totalorder %s1602_s28, 4  }
 0x400   : > { %s1606_s26 = smov %s1603_s14 }
 0x401   :  { %28 = sbr.rel (!%p26_p1) target bundleno = 8 (0x8), region = 117 }
 0x406   :  { %929 = vsyncpa [#allocation3], 1 }
 0x407   :  { %931 = vsyncpa [#allocation3 + $0x1], 1 }
 0x408   :  { %932 = vsyncpa [#allocation4], 1 }
 0x409   :  { %934 = vsyncpa [#allocation4 + $0x1], 1 }

</bundles_post_ra>
